<compile_context>
chip_gen: v7x
topology: tpu7x:2x2x1
jax: 0.10.0
libtpu: 0.0.40
codegen_flags: <defaults>
</compile_context>

<pallas_src>
import jax
import jax.numpy as jnp
from jax.experimental import pallas as pl
from jax.experimental.pallas import tpu as pltpu


def _measurement_kernel(x_ref, mt_ref, o_ref):
    # (TB, K) @ (K, N) -> (TB, N); measure^T arrives as bf16 (exact 0/1
    # values) and is upcast on the VPU, accumulation is f32 on the MXU.
    o_ref[...] = jnp.dot(
        x_ref[...],
        mt_ref[...].astype(jnp.float32),
        preferred_element_type=jnp.float32,
    )


def prepare_measure(measure):
    """One-time (init-time) prep of the fixed module buffer.

    measure: (out_dim, in_dim) float32, rows of the identity.
    Returns measure^T as (in_dim, out_dim) bfloat16 (bit-exact for 0/1).
    """
    return jnp.asarray(measure, jnp.float32).T.astype(jnp.bfloat16)


def measurement_forward(x, measure_t, *, batch_tile=None):
    """x: (B, in_dim) f32, measure_t: (in_dim, out_dim) bf16 -> (B, out_dim) f32."""
    B, K = x.shape
    K2, N = measure_t.shape
    assert K2 == K, (K2, K)

    x = x.astype(jnp.float32)

    # Default: whole batch in one grid step (grid=(1,)).  Full-extent blocks
    # are exempt from the (8,128) divisibility rule, so no padding is needed.
    if batch_tile is None or batch_tile >= B:
        tb = B
    else:
        assert batch_tile % 8 == 0, "batch_tile must be a multiple of 8"
        assert B % batch_tile == 0, "batch must divide evenly by batch_tile"
        tb = batch_tile
    grid = (B // tb,)

    return pl.pallas_call(
        _measurement_kernel,
        out_shape=jax.ShapeDtypeStruct((B, N), jnp.float32),
        grid=grid,
        in_specs=[
            pl.BlockSpec((tb, K), lambda i: (i, 0)),   # batch tile of x
            pl.BlockSpec((K, N), lambda i: (0, 0)),    # measure^T, resident
        ],
        out_specs=pl.BlockSpec((tb, N), lambda i: (i, 0)),
        compiler_params=pltpu.CompilerParams(
            dimension_semantics=("arbitrary",)),
    )(x, measure_t)


def measurement_reference(x, measure):
    """Pure-JAX reference mirroring the PyTorch forward (loop == one matmul)."""
    return x.astype(jnp.float32) @ measure.astype(jnp.float32).T


if __name__ == "__main__":
    # Small stand-ins for the real configuration (in_dim=99**2, out_dim=25,
    # bs=64).  in_dim deliberately NOT a multiple of 128 (like 99**2) to
    # exercise the unpadded full-extent block path.
    SIDE = 21
    IN_DIM = SIDE * SIDE      # 441
    OUT_DIM = 25
    BS = 8

    key = jax.random.PRNGKey(0)
    k_sel, k_x = jax.random.split(key)

    # Build `measure` like the module: delete (in_dim - out_dim) random rows
    # of eye(in_dim); surviving rows keep ascending-index order (np.delete).
    perm = jax.random.permutation(k_sel, IN_DIM)
    keep = jnp.sort(perm[:OUT_DIM])
    measure = jnp.eye(IN_DIM, dtype=jnp.float32)[keep]       # (OUT_DIM, IN_DIM)

    x = jax.random.normal(k_x, (BS, IN_DIM), jnp.float32)

    # TODO(synk): `self.net` (Linear/LeakyReLU stack) is unused in forward(); not implemented.
    measure_t = prepare_measure(measure)          # done once at "init"
    out = measurement_forward(x, measure_t)
    out = jax.block_until_ready(out)

    ref = measurement_reference(x, measure)
    assert out.shape == (BS, OUT_DIM), out.shape
    assert bool(jnp.allclose(out, ref, atol=1e-5, rtol=1e-5)), "mismatch vs reference"

    print("KERNEL_OK")
</pallas_src>

<mosaic_0001>
module attributes {stable_mosaic.version = 11 : i64} {
  func.func @_measurement_kernel(%arg0: i32, %arg1: memref<8x441xf32, #tpu.memory_space<vmem>>, %arg2: memref<441x25xbf16, #tpu.memory_space<vmem>>, %arg3: memref<8x25xf32, #tpu.memory_space<vmem>>) attributes {dimension_semantics = [#tpu.dimension_semantics<arbitrary>], iteration_bounds = array<i64: 1>, scalar_prefetch = 0 : i64, scratch_operands = 0 : i64, tpu.core_type = #tpu.core_type<tc>, window_params = [{transform_indices = @transform_0, window_bounds = array<i64: 8, 441>}, {pipeline_mode = #tpu.pipeline_mode<synchronous>, transform_indices = @transform_1, window_bounds = array<i64: 441, 25>}, {transform_indices = @transform_2, window_bounds = array<i64: 8, 25>}]} {
    %c0 = arith.constant 0 : index
    %c0_0 = arith.constant 0 : index
    %0 = vector.load %arg1[%c0, %c0_0] : memref<8x441xf32, #tpu.memory_space<vmem>>, vector<8x441xf32>
    %c0_1 = arith.constant 0 : index
    %c0_2 = arith.constant 0 : index
    %1 = vector.load %arg2[%c0_1, %c0_2] : memref<441x25xbf16, #tpu.memory_space<vmem>>, vector<441x25xbf16>
    %2 = arith.extf %1 : vector<441x25xbf16> to vector<441x25xf32>
    %cst = arith.constant dense<0.000000e+00> : vector<8x25xf32>
    %3 = tpu.matmul %0, %2, %cst {dimension_numbers = #tpu.dot_dimension_numbers<[1], [0], [0], [1], [0, 0, 1, 1], [], []>} : vector<8x441xf32>, vector<441x25xf32>, vector<8x25xf32> -> vector<8x25xf32>
    %c0_3 = arith.constant 0 : index
    %c0_4 = arith.constant 0 : index
    %4 = vector.load %arg3[%c0_3, %c0_4] : memref<8x25xf32, #tpu.memory_space<vmem>>, vector<8x25xf32>
    tpu.vector_store %arg3[%c0_3, %c0_4], %3 {strides = array<i32>} : memref<8x25xf32, #tpu.memory_space<vmem>>, vector<8x25xf32>,
    return
  }
  func.func @transform_0(%arg0: i32) -> (i32, i32) {
    %c0_i32 = arith.constant 0 : i32
    %c0_i32_0 = arith.constant 0 : i32
    return %arg0, %c0_i32 : i32, i32
  }
  func.func @transform_1(%arg0: i32) -> (i32, i32) {
    %c0_i32 = arith.constant 0 : i32
    %c0_i32_0 = arith.constant 0 : i32
    %c0_i32_1 = arith.constant 0 : i32
    return %c0_i32, %c0_i32_0 : i32, i32
  }
  func.func @transform_2(%arg0: i32) -> (i32, i32) {
    %c0_i32 = arith.constant 0 : i32
    %c0_i32_0 = arith.constant 0 : i32
    return %arg0, %c0_i32 : i32, i32
  }
}

</mosaic_0001>

<bundles_post_ra>
// kernel: tpu_custom_call.1
= control target key start
LH: loop header
LB: loop body
LE: loop exit
PB: predicated region body
PF: predicated region fallthrough
CT: control target
= control target key end

     0   :  { %v561_v1 = vmov 0.0|0.0   ;;  %vm128_vm0 = vcmask 465920   ;;  %s699_s0 = inlined_call_operand.vmem [shape: f32[8,441], index: 0, kind: input, shape index: {}]   ;;  %s700_s1 = inlined_call_operand.vmem [shape: bf16[441,25], index: 1, kind: input, shape index: {}]   ;;  %s701_s2 = inlined_call_operand.hbm [shape: f32[8,25], index: 2, kind: output, shape index: {}]  }
   0x1   :  { %v417_v0 = vld [vmem:[%s700_s1 + $0x80] sm:$0xff]   ;;  %495 = vmatprep.subr.bf16.mxu1 %v561_v1  ;;  %v410_v4 = vld [vmem:[%s700_s1 + $0x48] sm:$0xff]   ;;  %v411_v7 = vld [vmem:[%s700_s1 + $0x50] sm:$0xff]  }
   0x2   :  { %v409_v2 = vld [vmem:[%s700_s1 + $0x40] sm:$0xff]   ;;  %497 = vmatpush1.bf16.msra.mxu1 %v417_v0  ;;  %v418_v5 = vld [vmem:[%s700_s1 + $0x88] sm:$0xff]   ;;  %v419_v8 = vld [vmem:[%s700_s1 + $0x90] sm:$0xff]  }
   0x3   :  { %v295_v3 = vld [vmem:[%s700_s1] sm:$0xff]   ;;  %464 = vmatprep.subr.bf16.mxu0 %v409_v2  ;;  %498 = vmatprep.subr.bf16.mxu1 %v561_v1  ;;  %v402_v6 = vld [vmem:[%s700_s1 + $0x8] sm:$0xff]   ;;  %v403_v9 = vld [vmem:[%s700_s1 + $0x10] sm:$0xff]  }
   0x4   :  { %466 = vmatpush3.bf16.msra.mxu0 %v295_v3  ;;  %v412_v10 = vld [vmem:[%s700_s1 + $0x58] sm:$0xff]   ;;  %v13_v11 = vld [vmem:[%s699_s0 + $0x8] sm:$0xff] }
   0x5   :  { %468 = vmatprep.subr.bf16.mxu0 %v410_v4  ;;  %200 = vmatprep.mubr.f32.mxu0 %v13_v11  ;;  %v420_v12 = vld [vmem:[%s700_s1 + $0x98] sm:$0xff]  }
   0x6   :  { %500 = vmatpush1.bf16.msra.mxu1 %v418_v5  ;;  %v15_v13 = vld [vmem:[%s699_s0 + $0x18] sm:$0xff] }
   0x7   :  { %501 = vmatprep.subr.bf16.mxu1 %v561_v1 }
   0x8   :  { %470 = vmatpush3.bf16.msra.mxu0 %v402_v6 }
   0x9   :  { %472 = vmatprep.subr.bf16.mxu0 %v411_v7 }
   0xa   :  { %503 = vmatpush1.bf16.msra.mxu1 %v419_v8 }
   0xb   :  { %504 = vmatprep.subr.bf16.mxu1 %v561_v1 }
   0xc   :  { %474 = vmatpush3.bf16.msra.mxu0 %v403_v9 }
   0xd   :  { %7 = vsyncpa [#allocation3], 0  ;;  %476 = vmatprep.subr.bf16.mxu0 %v412_v10  ;;  %v404_v14 = vld [vmem:[%s700_s1 + $0x18] sm:$0xff]   ;;  %293 = vmatprep.mubr.msk.f32.mxu1 %vm128_vm0, %v15_v13  ;;  %v413_v15 = vld [vmem:[%s700_s1 + $0x60] sm:$0xff]   ;;  %vm132_vm1 = vcmask 1040384   ;;  %vm562_vm2 = vmmov 1  }
   0xe   :  { %506 = vmatpush1.bf16.msra.mxu1 %v420_v12  ;;  %v421_v16 = vld [vmem:[%s700_s1 + $0xa0] sm:$0xff]   ;;  %v414_v18 = vld [vmem:[%s700_s1 + $0x68] sm:$0xff]   ;;  %v415_v21 = vld [vmem:[%s700_s1 + $0x70] sm:$0xff]   ;;  %s563_s17 = smov [#allocation2]   ;;  %vm276_vm4 = vcmask 203776  }
   0xf   :  { %507 = vmatprep.subr.bf16.mxu1 %v561_v1  ;;  %v405_v17 = vld [vmem:[%s700_s1 + $0x20] sm:$0xff]   ;;  %v422_v19 = vld [vmem:[%s700_s1 + $0xa8] sm:$0xff]   ;;  %v423_v22 = vld [vmem:[%s700_s1 + $0xb0] sm:$0xff]   ;;  %s284_s18 = sshll.u32 %s563_s17, 4  ;;  %s285_s18 = int_to_ptr.vmem [resolvable:$true] %s284_s18 }
  0x10   :  { %478 = vmatpush3.bf16.msra.mxu0 %v404_v14  ;;  %v406_v20 = vld [vmem:[%s700_s1 + $0x28] sm:$0xff]   ;;  %v407_v23 = vld [vmem:[%s700_s1 + $0x30] sm:$0xff]   ;;  %v416_v24 = vld [vmem:[%s700_s1 + $0x78] sm:$0xff]   ;;  %p542_p1 = scmp.lt.s32.totalorder %s285_s18, %s285_s18 }
  0x11   :  { %480 = vmatprep.subr.bf16.mxu0 %v413_v15  ;;  %v424_v25 = vld [vmem:[%s700_s1 + $0xb8] sm:$0xff]   ;;  %v425_v27 = vld [vmem:[%s700_s1 + $0xc0] sm:$0xff]   ;;  %v426_v29 = vld [vmem:[%s700_s1 + $0xc8] sm:$0xff]  }
  0x12   :  { %509 = vmatpush1.bf16.msra.mxu1 %v421_v16  ;;  %v408_v26 = vld [vmem:[%s700_s1 + $0x38] sm:$0xff]   ;;  %v12_v28 = vld [vmem:[%s699_s0] sm:$0xff]  ;;  %v427_v30 = vld [vmem:[%s700_s1 + $0xd0] sm:$0xff]  }
  0x13   :  { %510 = vmatprep.subr.bf16.mxu1 %v561_v1  ;;  %v536_v31 = vld [vmem:[%s700_s1 + $0xd8] sm:$0x1f]   ;;  %vm530_vm3 = vmpackc.low %vm132_vm1, %vm562_vm2  ;;  %v14_v32 = vld [vmem:[%s699_s0 + $0x10] sm:$0xff]  ;;  %s537_s1 = scalar_lea.vmem %s285_s18, 128 }
  0x14   :  { %482 = vmatpush3.bf16.msra.mxu0 %v405_v17  ;;  %p538_p0 = scmp.ne.s32.totalorder %s285_s18, %s537_s1  ;;  %p543_p2 = scmp.lt.s32.totalorder %s537_s1, %s537_s1 }
  0x15   :  { %484 = vmatprep.subr.bf16.mxu0 %v414_v18 }
  0x16   :  { %512 = vmatpush1.bf16.msra.mxu1 %v422_v19  ;;  %p544_p3 = por %p543_p2, %p542_p1 }
  0x17   :  { %513 = vmatprep.subr.bf16.mxu1 %v561_v1 }
  0x18   :  { %486 = vmatpush3.bf16.msra.mxu0 %v406_v20  ;;  %p545_p4 = pnand %p544_p3, %p538_p0 }
  0x19   :  { %488 = vmatprep.subr.bf16.mxu0 %v415_v21 }
  0x1a   :  { %515 = vmatpush1.bf16.msra.mxu1 %v423_v22 }
  0x1b   :  { %516 = vmatprep.subr.bf16.mxu1 %v561_v1 }
  0x1c   :  { %490 = vmatpush3.bf16.msra.mxu0 %v407_v23 }
  0x1d   :  { %492 = vmatprep.subr.bf16.mxu0 %v416_v24 }
  0x1e   :  { %518 = vmatpush1.bf16.msra.mxu1 %v424_v25 }
  0x1f   :  { %519 = vmatprep.subr.bf16.mxu1 %v561_v1 }
  0x20   :  { %494 = vmatpush3.bf16.msra.mxu0 %v408_v26 }
  0x22   :  { %521 = vmatpush1.bf16.msra.mxu1 %v425_v27 }
  0x23   :  { %201 = vmatmul.mubr.f32.vlgmr.msra.gmra.mrb[0].mxu0 %v12_v28  ;;  %522 = vmatprep.subr.bf16.mxu1 %v561_v1 }
  0x26   :  { %524 = vmatpush1.bf16.msra.mxu1 %v426_v29 }
  0x27   :  { %525 = vmatprep.subr.bf16.mxu1 %v561_v1 }
  0x2a   :  { %527 = vmatpush1.bf16.msra.mxu1 %v427_v30 }
  0x2b   :  { %528 = vmatprep.subr.bf16.mxu1 %v561_v1 }
  0x2e   :  { %531 = vmatpush1.bf16.msk.msra.mxu1 %vm530_vm3, %v536_v31 }
  0x31   :  { %271 = vmatmul.mubr.f32.vlgmr.msra.gmra.mrb[0].mxu1 %v14_v32 }
  0xf6   :  { %v460_v33 = vpop.f32.mrb[0].mxu0 }
  0xf7   :  { %v461_v34 = vpop.f32.mrb[1].mxu0 }
  0xf8   :  { %v462_v35 = vadd.f32 %v461_v34, %v460_v33 }
 0x104   :  { %v272_v36 = vpop.f32.mrb[0].mxu1 }
 0x105   :  { %v273_v37 = vadd.f32 %v462_v35, %v272_v36  ;;  %v274_v38 = vpop.f32.mrb[1].mxu1 }
 0x107   :  { %277 = vst.msk [vmem:[#allocation2] sm:$0xff] %vm276_vm4, %v273_v37 }
 0x108   :  { %548 = shalt.err (!%p545_p4)
}
 0x109   :  { %s549_s20 = scalar_lea.hbm %s701_s2, 128 }
 0x10a   :  { %p550_p5 = scmp.ne.s32.totalorder %s701_s2, %s549_s20  ;;  %p553_p6 = scmp.lt.u32.totalorder %s549_s20, %s701_s2 }
 0x10c   :  { %p555_p7 = pnand %p553_p6, %p550_p5 }
 0x10e   :  { %558 = shalt.err (!%p555_p7)
}
 0x10f   :  { %287 = dma.vmem_to_hbm [thread:$0]  %s285_s18, 128, %s701_s2, [#allocation3]  }
 0x110   :  { %559 = dma.done.wait [#allocation3], 128  }
 0x111   :  { %560 = vsyncadd [#allocation3], 4294967168 }
 0x112   :  { %291 = vsyncpa [#allocation3], 1 }

</bundles_post_ra>
